<compile_context>
chip_gen: v7x
topology: tpu7x:2x2x1
jax: 0.10.0
libtpu: 0.0.40
codegen_flags: <defaults>
</compile_context>

<pallas_src>
import jax
import jax.numpy as jnp
from jax.experimental import pallas as pl
from jax.experimental.pallas import tpu as pltpu

NEG_SLOPE = 0.2
LN_EPS = 1e-5
MASK_VAL = -1e30          # finite sentinel (avoids -inf - -inf = NaN in the online softmax)
TILE_I = 128              # target-node tile
TILE_J = 128              # source-node tile
VMEM_LIMIT = 48 * 1024 * 1024   # above the 16/32 MiB scoped defaults, below v7x's 64 MiB physical


# ----------------------------- Pallas kernels -----------------------------

def _proj_kernel(x_ref, w_ref, b_ref, xl_ref, xr_ref):
    """Fused projection: one (TI, F) @ (F, 2H) MXU pass produces xl and xr tiles."""
    h = xl_ref.shape[-1]
    y = jnp.dot(x_ref[...], w_ref[...], preferred_element_type=jnp.float32) + b_ref[...]
    xl_ref[...] = y[:, :h]
    xr_ref[...] = y[:, h:]


def _gat_flash_step(xr_ref, xl_ref, adj_ref, att_ref, m_sc, l_sc, acc_sc):
    """One (i, j) tile of GATv2 attention with online (flash-style) softmax."""
    j = pl.program_id(1)

    @pl.when(j == 0)
    def _():
        m_sc[...] = jnp.full_like(m_sc, MASK_VAL)
        l_sc[...] = jnp.zeros_like(l_sc)
        acc_sc[...] = jnp.zeros_like(acc_sc)

    xr = xr_ref[...]                                        # (TI, H) targets
    xl = xl_ref[...]                                        # (TJ, H) sources
    s = xr[:, None, :] + xl[None, :, :]                     # (TI, TJ, H) pairwise pre-activation
    s = jnp.where(s >= 0.0, s, NEG_SLOPE * s)               # LeakyReLU(0.2)
    e = jnp.sum(s * att_ref[...][None, :, :], axis=-1)      # (TI, TJ) attention scores
    e = jnp.where(adj_ref[...] > 0, e, MASK_VAL)            # mask non-edges (bf16 adj, mask only)

    m_prev = m_sc[...]
    m_new = jnp.maximum(m_prev, jnp.max(e, axis=-1, keepdims=True))
    a = jnp.exp(m_prev - m_new)                             # rescale previous partial sums
    p = jnp.exp(e - m_new)                                  # masked entries underflow to 0
    l_sc[...] = a * l_sc[...] + jnp.sum(p, axis=-1, keepdims=True)
    acc_sc[...] = a * acc_sc[...] + jnp.dot(p, xl, preferred_element_type=jnp.float32)
    m_sc[...] = m_new


def _gat_finalize(bias_ref, l_sc, acc_sc):
    inv_l = pl.reciprocal(l_sc[...], approx=True)           # EUP, not a VALU divide
    return acc_sc[...] * inv_l + bias_ref[...]


def gat_relu_ln_kernel(xr_ref, xl_ref, adj_ref, att_ref, bias_ref, gamma_ref, beta_ref,
                       o_ref, m_sc, l_sc, acc_sc):
    """GATv2 layer 1 with fused relu + LayerNorm epilogue."""
    _gat_flash_step(xr_ref, xl_ref, adj_ref, att_ref, m_sc, l_sc, acc_sc)

    @pl.when(pl.program_id(1) == pl.num_programs(1) - 1)
    def _():
        out = _gat_finalize(bias_ref, l_sc, acc_sc)
        out = jnp.maximum(out, 0.0)                                       # relu
        mean = jnp.mean(out, axis=-1, keepdims=True)                      # LayerNorm (per node)
        var = jnp.mean(jnp.square(out - mean), axis=-1, keepdims=True)
        out = (out - mean) * jax.lax.rsqrt(var + LN_EPS)
        o_ref[...] = out * gamma_ref[...] + beta_ref[...]


def gat_kernel(xr_ref, xl_ref, adj_ref, att_ref, bias_ref, o_ref, m_sc, l_sc, acc_sc):
    """GATv2 layer 2 (bias-only epilogue)."""
    _gat_flash_step(xr_ref, xl_ref, adj_ref, att_ref, m_sc, l_sc, acc_sc)

    @pl.when(pl.program_id(1) == pl.num_programs(1) - 1)
    def _():
        o_ref[...] = _gat_finalize(bias_ref, l_sc, acc_sc)


def pool_linear_kernel(pool_ref, h_ref, w_ref, b_ref, o_ref):
    pooled = jnp.dot(pool_ref[...], h_ref[...], preferred_element_type=jnp.float32)  # (G, H)
    # TODO(synk): F.dropout(p=0.5) is identity in eval mode (training=False); RNG dropout not emitted.
    o_ref[...] = (jnp.dot(pooled, w_ref[...], preferred_element_type=jnp.float32)
                  + b_ref[...])                                                       # (G, C)


# ----------------------------- wrappers -----------------------------

def _compiler_params(dims):
    return pltpu.CompilerParams(dimension_semantics=dims, vmem_limit_bytes=VMEM_LIMIT)


def _project(x, w, b, hidden, *, tile=TILE_I):
    n, f = x.shape
    out_sd = jax.ShapeDtypeStruct((n, hidden), jnp.float32)
    row_spec = pl.BlockSpec((tile, hidden), lambda i: (i, 0))
    return pl.pallas_call(
        _proj_kernel,
        out_shape=(out_sd, out_sd),
        grid_spec=pltpu.PrefetchScalarGridSpec(
            num_scalar_prefetch=0,
            grid=(n // tile,),
            in_specs=[pl.BlockSpec((tile, f), lambda i: (i, 0)),
                      pl.BlockSpec((f, 2 * hidden), lambda i: (0, 0)),
                      pl.BlockSpec((1, 2 * hidden), lambda i: (0, 0))],
            out_specs=[row_spec, row_spec]),
        compiler_params=_compiler_params(("parallel",)),
    )(x, w, b)


def _gat_attention(xr, xl, adj_b16, att, bias, gamma=None, beta=None,
                   *, tile_i=TILE_I, tile_j=TILE_J):
    n, h = xr.shape
    vec_spec = pl.BlockSpec((1, h), lambda i, j: (0, 0))
    in_specs = [pl.BlockSpec((tile_i, h), lambda i, j: (i, 0)),        # xr (target rows)
                pl.BlockSpec((tile_j, h), lambda i, j: (j, 0)),        # xl (source rows)
                pl.BlockSpec((tile_i, tile_j), lambda i, j: (i, j)),   # adj tile (bf16 mask)
                vec_spec,                                              # att
                vec_spec]                                              # bias
    args = [xr, xl, adj_b16, att, bias]
    if gamma is None:
        kernel = gat_kernel
    else:
        kernel = gat_relu_ln_kernel
        in_specs += [vec_spec, vec_spec]
        args += [gamma, beta]
    return pl.pallas_call(
        kernel,
        out_shape=jax.ShapeDtypeStruct((n, h), jnp.float32),
        grid_spec=pltpu.PrefetchScalarGridSpec(
            num_scalar_prefetch=0,
            grid=(n // tile_i, n // tile_j),
            in_specs=in_specs,
            out_specs=pl.BlockSpec((tile_i, h), lambda i, j: (i, 0)),
            scratch_shapes=[pltpu.VMEM((tile_i, 1), jnp.float32),   # running max
                            pltpu.VMEM((tile_i, 1), jnp.float32),   # running sum
                            pltpu.VMEM((tile_i, h), jnp.float32)]), # accumulator
        compiler_params=_compiler_params(("parallel", "arbitrary")),
    )(*args)


def _full_spec(shape):
    nd = len(shape)
    return pl.BlockSpec(shape, lambda i, _nd=nd: (0,) * _nd)


def _pool_linear(pool, h, w, b):
    g, c = pool.shape[0], w.shape[1]
    args = (pool, h, w, b)
    return pl.pallas_call(
        pool_linear_kernel,
        out_shape=jax.ShapeDtypeStruct((g, c), jnp.float32),
        grid=(1,),
        in_specs=[_full_spec(a.shape) for a in args],
        out_specs=_full_spec((g, c)),
        compiler_params=_compiler_params(("arbitrary",)),
    )(*args)


def _round_up(n, m):
    return ((n + m - 1) // m) * m


def gcn_forward(x, adj, pool, p, *, tile_i=TILE_I, tile_j=TILE_J):
    n = x.shape[0]
    hidden = p["c1_att"].shape[1]
    n_pad = _round_up(n, max(tile_i, tile_j))

    # Pad node count to a tile multiple. Dummy nodes get only a self-loop (so their softmax row
    # stays well-defined) and zero pool weight (so they never touch the per-graph mean).
    x_p = jnp.pad(x, ((0, n_pad - n), (0, 0)))
    adj_p = jnp.zeros((n_pad, n_pad), jnp.float32).at[:n, :n].set(adj)
    if n_pad > n:
        dummy = jnp.arange(n, n_pad)
        adj_p = adj_p.at[dummy, dummy].set(1.0)
    adj_b16 = adj_p.astype(jnp.bfloat16)      # adjacency is only a mask: ship 2x less HBM
    pool_p = jnp.pad(pool, ((0, 0), (0, n_pad - n)))

    # layer 1: GATv2 -> relu -> LayerNorm (fused epilogue)
    xl1, xr1 = _project(x_p, p["c1_w"], p["c1_b"], hidden, tile=tile_i)
    h1 = _gat_attention(xr1, xl1, adj_b16, p["c1_att"], p["c1_bias"],
                        p["ln_gamma"], p["ln_beta"], tile_i=tile_i, tile_j=tile_j)
    # layer 2: GATv2
    xl2, xr2 = _project(h1, p["c2_w"], p["c2_b"], hidden, tile=tile_i)
    h2 = _gat_attention(xr2, xl2, adj_b16, p["c2_att"], p["c2_bias"],
                        tile_i=tile_i, tile_j=tile_j)
    # global_mean_pool -> dropout(identity, eval) -> Linear
    return _pool_linear(pool_p, h2, p["lin_w"], p["lin_b"])


# ----------------------------- param / input setup -----------------------------

def glorot(key, shape):
    fan_in, fan_out = shape[-2], shape[-1]
    lim = (6.0 / (fan_in + fan_out)) ** 0.5
    return jax.random.uniform(key, shape, jnp.float32, -lim, lim)


def make_params(key, fin, hidden, num_classes):
    ks = jax.random.split(key, 8)
    return {
        # conv1: GATv2Conv(fin, hidden); W_l | W_r fused into one (fin, 2H) weight
        "c1_w": jnp.concatenate([glorot(ks[0], (fin, hidden)),
                                 glorot(ks[1], (fin, hidden))], axis=1),
        "c1_b": jnp.zeros((1, 2 * hidden), jnp.float32),
        "c1_att": glorot(ks[2], (1, hidden)),
        "c1_bias": jnp.zeros((1, hidden), jnp.float32),
        # LayerNorm(hidden)
        "ln_gamma": jnp.ones((1, hidden), jnp.float32),
        "ln_beta": jnp.zeros((1, hidden), jnp.float32),
        # conv2: GATv2Conv(hidden, hidden)
        "c2_w": jnp.concatenate([glorot(ks[3], (hidden, hidden)),
                                 glorot(ks[4], (hidden, hidden))], axis=1),
        "c2_b": jnp.zeros((1, 2 * hidden), jnp.float32),
        "c2_att": glorot(ks[5], (1, hidden)),
        "c2_bias": jnp.zeros((1, hidden), jnp.float32),
        # lin: Linear(hidden, num_classes)  (stored as (hidden, num_classes) = W^T)
        "lin_w": glorot(ks[6], (hidden, num_classes)),
        "lin_b": jnp.zeros((1, num_classes), jnp.float32),
    }


def make_graph(num_graphs, nodes_per_graph):
    """Ring graphs; returns dense adjacency (adj[i, j]=1 iff edge j->i, self-loops added,
    matching GATv2Conv's add_self_loops=True) and the mean-pool matrix (G, N)."""
    N = num_graphs * nodes_per_graph
    src, dst = [], []
    for g in range(num_graphs):
        base = g * nodes_per_graph
        for i in range(nodes_per_graph):
            a = base + i
            b = base + (i + 1) % nodes_per_graph
            src += [a, b]
            dst += [b, a]
    src = jnp.array(src, jnp.int32)
    dst = jnp.array(dst, jnp.int32)
    adj = jnp.zeros((N, N), jnp.float32).at[dst, src].set(1.0)
    adj = adj.at[jnp.arange(N), jnp.arange(N)].set(1.0)                       # self-loops

    batch = jnp.repeat(jnp.arange(num_graphs, dtype=jnp.int32), nodes_per_graph)
    onehot = (batch[None, :] == jnp.arange(num_graphs)[:, None]).astype(jnp.float32)
    pool = onehot / jnp.sum(onehot, axis=1, keepdims=True)                    # mean pool (G, N)
    return adj, pool


# ----------------------------- main -----------------------------

if __name__ == "__main__":
    num_node_features = 8
    hidden_channels = 32
    num_classes = 4
    num_graphs = 2
    nodes_per_graph = 96          # N = 192 -> padded to 256 -> 2x2 attention grid
    N = num_graphs * nodes_per_graph

    key = jax.random.PRNGKey(0)
    k_x, k_p = jax.random.split(key)

    x = jax.random.normal(k_x, (N, num_node_features), jnp.float32)
    adj, pool = make_graph(num_graphs, nodes_per_graph)
    params = make_params(k_p, num_node_features, hidden_channels, num_classes)

    logits = gcn_forward(x, adj, pool, params)
    logits = jax.block_until_ready(logits)
    assert logits.shape == (num_graphs, num_classes)
    assert bool(jnp.all(jnp.isfinite(logits)))
    print("KERNEL_OK")
</pallas_src>

<mosaic_0001>
module attributes {stable_mosaic.version = 11 : i64} {
  func.func @_proj_kernel(%arg0: i32, %arg1: memref<128x8xf32, #tpu.memory_space<vmem>>, %arg2: memref<8x64xf32, #tpu.memory_space<vmem>>, %arg3: memref<1x64xf32, #tpu.memory_space<vmem>>, %arg4: memref<128x32xf32, #tpu.memory_space<vmem>>, %arg5: memref<128x32xf32, #tpu.memory_space<vmem>>) attributes {dimension_semantics = [#tpu.dimension_semantics<parallel>], iteration_bounds = array<i64: 2>, scalar_prefetch = 0 : i64, scratch_operands = 0 : i64, tpu.core_type = #tpu.core_type<tc>, window_params = [{transform_indices = @transform_0, window_bounds = array<i64: 128, 8>}, {pipeline_mode = #tpu.pipeline_mode<synchronous>, transform_indices = @transform_1, window_bounds = array<i64: 8, 64>}, {pipeline_mode = #tpu.pipeline_mode<synchronous>, transform_indices = @transform_2, window_bounds = array<i64: 1, 64>}, {transform_indices = @transform_3, window_bounds = array<i64: 128, 32>}, {transform_indices = @transform_4, window_bounds = array<i64: 128, 32>}]} {
    %c0 = arith.constant 0 : index
    %c0_0 = arith.constant 0 : index
    %0 = vector.load %arg1[%c0, %c0_0] : memref<128x8xf32, #tpu.memory_space<vmem>>, vector<128x8xf32>
    %c0_1 = arith.constant 0 : index
    %c0_2 = arith.constant 0 : index
    %1 = vector.load %arg2[%c0_1, %c0_2] : memref<8x64xf32, #tpu.memory_space<vmem>>, vector<8x64xf32>
    %cst = arith.constant dense<0.000000e+00> : vector<128x64xf32>
    %2 = tpu.matmul %0, %1, %cst {dimension_numbers = #tpu.dot_dimension_numbers<[1], [0], [0], [1], [0, 0, 1, 1], [], []>} : vector<128x8xf32>, vector<8x64xf32>, vector<128x64xf32> -> vector<128x64xf32>
    %c0_3 = arith.constant 0 : index
    %c0_4 = arith.constant 0 : index
    %3 = vector.load %arg3[%c0_3, %c0_4] : memref<1x64xf32, #tpu.memory_space<vmem>>, vector<1x64xf32>
    %4 = vector.broadcast %3 : vector<1x64xf32> to vector<128x64xf32>
    %5 = arith.addf %2, %4 : vector<128x64xf32>
    %6 = vector.extract_strided_slice %5 {offsets = [0, 0], sizes = [128, 32], strides = [1, 1]} : vector<128x64xf32> to vector<128x32xf32>
    %c0_5 = arith.constant 0 : index
    %c0_6 = arith.constant 0 : index
    %7 = vector.load %arg4[%c0_5, %c0_6] : memref<128x32xf32, #tpu.memory_space<vmem>>, vector<128x32xf32>
    tpu.vector_store %arg4[%c0_5, %c0_6], %6 {strides = array<i32>} : memref<128x32xf32, #tpu.memory_space<vmem>>, vector<128x32xf32>,
    %8 = vector.extract_strided_slice %5 {offsets = [0, 32], sizes = [128, 32], strides = [1, 1]} : vector<128x64xf32> to vector<128x32xf32>
    %c0_7 = arith.constant 0 : index
    %c0_8 = arith.constant 0 : index
    %9 = vector.load %arg5[%c0_7, %c0_8] : memref<128x32xf32, #tpu.memory_space<vmem>>, vector<128x32xf32>
    tpu.vector_store %arg5[%c0_7, %c0_8], %8 {strides = array<i32>} : memref<128x32xf32, #tpu.memory_space<vmem>>, vector<128x32xf32>,
    return
  }
  func.func @transform_0(%arg0: i32) -> (i32, i32) {
    %c0_i32 = arith.constant 0 : i32
    %c0_i32_0 = arith.constant 0 : i32
    return %arg0, %c0_i32 : i32, i32
  }
  func.func @transform_1(%arg0: i32) -> (i32, i32) {
    %c0_i32 = arith.constant 0 : i32
    %c0_i32_0 = arith.constant 0 : i32
    %c0_i32_1 = arith.constant 0 : i32
    return %c0_i32, %c0_i32_0 : i32, i32
  }
  func.func @transform_2(%arg0: i32) -> (i32, i32) {
    %c0_i32 = arith.constant 0 : i32
    %c0_i32_0 = arith.constant 0 : i32
    %c0_i32_1 = arith.constant 0 : i32
    return %c0_i32, %c0_i32_0 : i32, i32
  }
  func.func @transform_3(%arg0: i32) -> (i32, i32) {
    %c0_i32 = arith.constant 0 : i32
    %c0_i32_0 = arith.constant 0 : i32
    return %arg0, %c0_i32 : i32, i32
  }
  func.func @transform_4(%arg0: i32) -> (i32, i32) {
    %c0_i32 = arith.constant 0 : i32
    %c0_i32_0 = arith.constant 0 : i32
    return %arg0, %c0_i32 : i32, i32
  }
}

</mosaic_0001>

<bundles_post_ra>
// kernel: tpu_custom_call.1
= control target key start
LH: loop header
LB: loop body
LE: loop exit
PB: predicated region body
PF: predicated region fallthrough
CT: control target
= control target key end

     0   :  { %s738_s15 = smov 0   ;;  %s869_s0 = inlined_call_operand.vmem [shape: f32[256,8], index: 0, kind: input, shape index: {}]   ;;  %s870_s1 = inlined_call_operand.vmem [shape: f32[8,64], index: 1, kind: input, shape index: {}]   ;;  %s871_s2 = inlined_call_operand.vmem [shape: f32[1,64], index: 2, kind: input, shape index: {}]   ;;  %s872_s3 = inlined_call_operand.vmem [shape: f32[256,32], index: 3, kind: output, shape index: {0}]   ;;  %s873_s4 = inlined_call_operand.vmem [shape: f32[256,32], index: 4, kind: output, shape index: {1}]  }
   0x1 LB: > { %s620_s16 = sadd.s32 4294967295, %s710_s15   ;;  %p624_p0 = scmp.ge.s32.totalorder %s710_s15, 1  ;;  %s710_s15 = sphi %s738_s15, %s15_s15  }
   0x2   : > { %p166_p1 = scmp.lt.s32.totalorder %s710_s15, 3 }
   0x4   : > { %p167_p2 = pnand %p624_p0, %p166_p1 }
   0x5   : > { %v231_v0 = vld [vmem:[%s870_s1] sm:$0xff] (!%p167_p2)  ;;  %s625_s19 = sshll.u32 (!%p167_p2), %s620_s16, 4  ;;  %vm239_vm0 = vcmask (!%p167_p2), 64512   ;;  %vm433_vm1 = vcmask (!%p167_p2), 261120   ;;  %s712_s29 = smov (!%p167_p2), 96  }
   0x6   : > { %170 = sbr.rel (%p167_p2) target bundleno = 377 (0x179), region = 32  ;;  %667 = vmatprep.subr.mxu0 (!%p167_p2), %v231_v0  ;;  %693 = vmatprep.subr.mxu1 (!%p167_p2), %v231_v0  ;;  %p198_p3 = scmp.lt.s32.totalorder (!%p167_p2), %s625_s19, 31  ;;  %v631_v17 = vld [vmem:[%s871_s2] ss:$0 sm:$0xff] (!%p167_p2) }
   0x7   : > { %668 = vmatpush3.msra.mxu0 (!%p167_p2), %v231_v0  ;;  %694 = vmatpush3.msra.mxu1 (!%p167_p2), %v231_v0 }
   0xd   : > { %s875_s19 = smov (!%p198_p3, %s625_s19), 31 }
   0xe   : > { %s749_s20 = sshll.u32 %s875_s19, 3 }
   0xf   : > { %s201_s23 = scalar_lea.vmem %s869_s0, %s749_s20  ;;  %s778_s28 = scalar_lea.vmem %s872_s3, %s749_s20 }
  0x10   : > { %v215_v1 = vld [vmem:[%s201_s23] sm:$0xff]  ;;  %v216_v3 = vld [vmem:[%s201_s23 + $0x8] sm:$0xff]  ;;  %v217_v5 = vld [vmem:[%s201_s23 + $0x10] sm:$0xff]  ;;  %s832_s6 = scalar_lea.vmem %s873_s4, %s749_s20 }
  0x11   : > { %v223_v2 = vld [vmem:[%s201_s23 + $0x40] sm:$0xff]  ;;  %669 = vmatprep.mubr.msk.f32.mxu0 %vm239_vm0, %v215_v1  ;;  %v224_v4 = vld [vmem:[%s201_s23 + $0x48] sm:$0xff]  ;;  %v225_v6 = vld [vmem:[%s201_s23 + $0x50] sm:$0xff] }
  0x12   : > { %681 = vmatprep.mubr.msk.f32.mxu1 %vm239_vm0, %v223_v2  ;;  %670 = vmatmul.mubr.msk.f32.vlgmr.msra.gmra.mrb[0].mxu0 %vm239_vm0, %v216_v3  ;;  %v218_v7 = vld [vmem:[%s201_s23 + $0x18] sm:$0xff]  ;;  %v219_v9 = vld [vmem:[%s201_s23 + $0x20] sm:$0xff]  ;;  %v220_v11 = vld [vmem:[%s201_s23 + $0x28] sm:$0xff] }
  0x13   : > { %682 = vmatmul.mubr.msk.f32.vlgmr.msra.gmra.mrb[0].mxu1 %vm239_vm0, %v224_v4  ;;  %672 = vmatprep.mubr.msk.f32.mxu0 %vm239_vm0, %v217_v5  ;;  %v226_v8 = vld [vmem:[%s201_s23 + $0x58] sm:$0xff]  ;;  %v227_v10 = vld [vmem:[%s201_s23 + $0x60] sm:$0xff]  ;;  %v228_v12 = vld [vmem:[%s201_s23 + $0x68] sm:$0xff] }
  0x14   : > { %684 = vmatprep.mubr.msk.f32.mxu1 %vm239_vm0, %v225_v6  ;;  %v221_v13 = vld [vmem:[%s201_s23 + $0x30] sm:$0xff]  ;;  %v222_v15 = vld [vmem:[%s201_s23 + $0x38] sm:$0xff] }
  0x15   : > { %v229_v14 = vld [vmem:[%s201_s23 + $0x70] sm:$0xff]  ;;  %v230_v16 = vld [vmem:[%s201_s23 + $0x78] sm:$0xff] }
  0x16   : > { %673 = vmatmul.mubr.msk.f32.gmra.mrb[2].mxu0 %vm239_vm0, %v218_v7 }
  0x17   : > { %685 = vmatmul.mubr.msk.f32.gmra.mrb[2].mxu1 %vm239_vm0, %v226_v8  ;;  %675 = vmatprep.mubr.msk.f32.mxu0 %vm239_vm0, %v219_v9 }
  0x18   : > { %687 = vmatprep.mubr.msk.f32.mxu1 %vm239_vm0, %v227_v10 }
  0x1a   : > { %676 = vmatmul.mubr.msk.f32.gmra.mrb[4].mxu0 %vm239_vm0, %v220_v11 }
  0x1b   : > { %688 = vmatmul.mubr.msk.f32.gmra.mrb[4].mxu1 %vm239_vm0, %v228_v12  ;;  %678 = vmatprep.mubr.msk.f32.mxu0 %vm239_vm0, %v221_v13 }
  0x1c   : > { %690 = vmatprep.mubr.msk.f32.mxu1 %vm239_vm0, %v229_v14 }
  0x1e   : > { %679 = vmatmul.mubr.msk.f32.gmra.mrb[6].mxu0 %vm239_vm0, %v222_v15 }
  0x1f   : > { %691 = vmatmul.mubr.msk.f32.gmra.mrb[6].mxu1 %vm239_vm0, %v230_v16 }
  0xe5   : > { %v671_v18 = vpop.f32.mrb[0].mxu0 }
  0xe6   : > { %v683_v19 = vpop.f32.mrb[0].mxu1  ;;  %v360_v20 = vadd.f32 %v671_v18, %v631_v17  ;;  %v354_v22 = vpop.f32.mrb[1].mxu0 }
  0xe7   : > { %v400_v21 = vadd.f32 %v683_v19, %v631_v17  ;;  %v394_v23 = vpop.f32.mrb[1].mxu1  ;;  %v355_v24 = vadd.f32 %v631_v17, %v354_v22 }
  0xe8   : > { %v395_v25 = vadd.f32 %v631_v17, %v394_v23  ;;  %435 = vst.msk [vmem:[%s778_s28 + $0x8] sm:$0xff] %vm433_vm1, %v360_v20  ;;  %468 = vrot.lane.b32.xlu0 %v360_v20, %s712_s29 }
  0xe9   : > { %443 = vst.msk [vmem:[%s778_s28 + $0x48] sm:$0xff] %vm433_vm1, %v400_v21  ;;  %484 = vrot.lane.b32.xlu1 %v400_v21, %s712_s29  ;;  %434 = vst.msk [vmem:[%s778_s28] sm:$0xff] %vm433_vm1, %v355_v24  ;;  %v674_v26 = vpop.f32.mrb[2].mxu0 }
  0xea   : > { %442 = vst.msk [vmem:[%s778_s28 + $0x40] sm:$0xff] %vm433_vm1, %v395_v25  ;;  %v686_v27 = vpop.f32.mrb[2].mxu1  ;;  %v370_v28 = vadd.f32 %v674_v26, %v631_v17  ;;  %v364_v29 = vpop.f32.mrb[3].mxu0 }
  0xeb   : > { %v410_v30 = vadd.f32 %v686_v27, %v631_v17  ;;  %v404_v31 = vpop.f32.mrb[3].mxu1  ;;  %v365_v32 = vadd.f32 %v631_v17, %v364_v29 }
  0xec   : > { %v405_v33 = vadd.f32 %v631_v17, %v404_v31  ;;  %437 = vst.msk [vmem:[%s778_s28 + $0x18] sm:$0xff] %vm433_vm1, %v370_v28  ;;  %466 = vrot.lane.b32.xlu0 %v355_v24, %s712_s29 }
  0xed   : > { %445 = vst.msk [vmem:[%s778_s28 + $0x58] sm:$0xff] %vm433_vm1, %v410_v30  ;;  %472 = vrot.lane.b32.xlu1 %v370_v28, %s712_s29  ;;  %436 = vst.msk [vmem:[%s778_s28 + $0x10] sm:$0xff] %vm433_vm1, %v365_v32  ;;  %v677_v34 = vpop.f32.mrb[4].mxu0 }
  0xee   : > { %444 = vst.msk [vmem:[%s778_s28 + $0x50] sm:$0xff] %vm433_vm1, %v405_v33  ;;  %v689_v35 = vpop.f32.mrb[4].mxu1  ;;  %v380_v36 = vadd.f32 %v677_v34, %v631_v17  ;;  %v374_v37 = vpop.f32.mrb[5].mxu0 }
  0xef   : > { %v420_v38 = vadd.f32 %v689_v35, %v631_v17  ;;  %v414_v39 = vpop.f32.mrb[5].mxu1  ;;  %v375_v40 = vadd.f32 %v631_v17, %v374_v37 }
  0xf0   : > { %v415_v41 = vadd.f32 %v631_v17, %v414_v39  ;;  %482 = vrot.lane.b32.xlu0 %v395_v25, %s712_s29  ;;  %439 = vst.msk [vmem:[%s778_s28 + $0x28] sm:$0xff] %vm433_vm1, %v380_v36 }
  0xf1   : > { %488 = vrot.lane.b32.xlu1 %v410_v30, %s712_s29  ;;  %447 = vst.msk [vmem:[%s778_s28 + $0x68] sm:$0xff] %vm433_vm1, %v420_v38  ;;  %438 = vst.msk [vmem:[%s778_s28 + $0x20] sm:$0xff] %vm433_vm1, %v375_v40  ;;  %v680_v42 = vpop.f32.mrb[6].mxu0 }
  0xf2   : > { %446 = vst.msk [vmem:[%s778_s28 + $0x60] sm:$0xff] %vm433_vm1, %v415_v41  ;;  %v692_v43 = vpop.f32.mrb[6].mxu1  ;;  %v390_v44 = vadd.f32 %v680_v42, %v631_v17  ;;  %v384_v45 = vpop.f32.mrb[7].mxu0 }
  0xf3   : > { %v430_v46 = vadd.f32 %v692_v43, %v631_v17  ;;  %v424_v47 = vpop.f32.mrb[7].mxu1  ;;  %v385_v48 = vadd.f32 %v631_v17, %v384_v45 }
  0xf4   : > { %v425_v49 = vadd.f32 %v631_v17, %v424_v47  ;;  %486 = vrot.lane.b32.xlu0 %v405_v33, %s712_s29  ;;  %441 = vst.msk [vmem:[%s778_s28 + $0x38] sm:$0xff] %vm433_vm1, %v390_v44 }
  0xf5   : > { %470 = vrot.lane.b32.xlu1 %v365_v32, %s712_s29  ;;  %449 = vst.msk [vmem:[%s778_s28 + $0x78] sm:$0xff] %vm433_vm1, %v430_v46  ;;  %440 = vst.msk [vmem:[%s778_s28 + $0x30] sm:$0xff] %vm433_vm1, %v385_v48 }
  0xf6   : > { %448 = vst.msk [vmem:[%s778_s28 + $0x70] sm:$0xff] %vm433_vm1, %v425_v49 }
  0xf8   : > { %474 = vrot.lane.b32.xlu0 %v375_v40, %s712_s29 }
  0xf9   : > { %476 = vrot.lane.b32.xlu1 %v380_v36, %s712_s29 }
  0xfc   : > { %490 = vrot.lane.b32.xlu0 %v415_v41, %s712_s29 }
  0xfd   : > { %492 = vrot.lane.b32.xlu1 %v420_v38, %s712_s29 }
 0x100   : > { %478 = vrot.lane.b32.xlu0 %v385_v48, %s712_s29 }
 0x101   : > { %480 = vrot.lane.b32.xlu1 %v390_v44, %s712_s29 }
 0x104   : > { %494 = vrot.lane.b32.xlu0 %v425_v49, %s712_s29 }
 0x105   : > { %496 = vrot.lane.b32.xlu1 %v430_v46, %s712_s29 }
 0x15a   : > { %v469_v51 = vpop.permute.xlu0 %468 }
 0x15b   : > { %v485_v50 = vpop.permute.xlu1 %484  ;;  %515 = vst.msk [vmem:[%s832_s6 + $0x8] sm:$0xff] %vm433_vm1, %v469_v51 }
 0x15c   : > { %523 = vst.msk [vmem:[%s832_s6 + $0x48] sm:$0xff] %vm433_vm1, %v485_v50 }
 0x15e   : > { %v467_v53 = vpop.permute.xlu0 %466 }
 0x15f   : > { %v473_v52 = vpop.permute.xlu1 %472  ;;  %514 = vst.msk [vmem:[%s832_s6] sm:$0xff] %vm433_vm1, %v467_v53 }
 0x160   : > { %517 = vst.msk [vmem:[%s832_s6 + $0x18] sm:$0xff] %vm433_vm1, %v473_v52 }
 0x162   : > { %v483_v55 = vpop.permute.xlu0 %482 }
 0x163   : > { %v489_v54 = vpop.permute.xlu1 %488  ;;  %522 = vst.msk [vmem:[%s832_s6 + $0x40] sm:$0xff] %vm433_vm1, %v483_v55 }
 0x164   : > { %525 = vst.msk [vmem:[%s832_s6 + $0x58] sm:$0xff] %vm433_vm1, %v489_v54 }
 0x166   : > { %v487_v57 = vpop.permute.xlu0 %486 }
 0x167   : > { %v471_v56 = vpop.permute.xlu1 %470  ;;  %524 = vst.msk [vmem:[%s832_s6 + $0x50] sm:$0xff] %vm433_vm1, %v487_v57 }
 0x168   : > { %516 = vst.msk [vmem:[%s832_s6 + $0x10] sm:$0xff] %vm433_vm1, %v471_v56 }
 0x16a   : > { %v475_v59 = vpop.permute.xlu0 %474 }
 0x16b   : > { %v477_v58 = vpop.permute.xlu1 %476  ;;  %518 = vst.msk [vmem:[%s832_s6 + $0x20] sm:$0xff] %vm433_vm1, %v475_v59 }
 0x16c   : > { %519 = vst.msk [vmem:[%s832_s6 + $0x28] sm:$0xff] %vm433_vm1, %v477_v58 }
 0x16e   : > { %v491_v61 = vpop.permute.xlu0 %490 }
 0x16f   : > { %v493_v60 = vpop.permute.xlu1 %492  ;;  %526 = vst.msk [vmem:[%s832_s6 + $0x60] sm:$0xff] %vm433_vm1, %v491_v61 }
 0x170   : > { %527 = vst.msk [vmem:[%s832_s6 + $0x68] sm:$0xff] %vm433_vm1, %v493_v60 }
 0x172   : > { %v479_v63 = vpop.permute.xlu0 %478 }
 0x173   : > { %v481_v62 = vpop.permute.xlu1 %480  ;;  %520 = vst.msk [vmem:[%s832_s6 + $0x30] sm:$0xff] %vm433_vm1, %v479_v63 }
 0x174   : > { %521 = vst.msk [vmem:[%s832_s6 + $0x38] sm:$0xff] %vm433_vm1, %v481_v62 }
 0x176   : > { %v495_v1 = vpop.permute.xlu0 %494 }
 0x177   : > { %v497_v0 = vpop.permute.xlu1 %496  ;;  %528 = vst.msk [vmem:[%s832_s6 + $0x70] sm:$0xff] %vm433_vm1, %v495_v1 }
 0x178   : > { %529 = vst.msk [vmem:[%s832_s6 + $0x78] sm:$0xff] %vm433_vm1, %v497_v0 }
 0x179 PF: > { %s15_s15 = sadd.s32 1, %s710_s15  }
 0x17a   : > { %p12_p4 = scmp.ge.s32.totalorder %s15_s15, 4  }
 0x17c   :  { %14 = sbr.rel (!%p12_p4) target bundleno = 1 (0x1), region = 74 }

</bundles_post_ra>
